<compile_context>
chip_gen: v7x
topology: tpu7x:2x2x1
jax: 0.10.0
libtpu: 0.0.40
codegen_flags: <defaults>
</compile_context>

<pallas_src>
import jax
import jax.numpy as jnp
import numpy as np
from jax.experimental import pallas as pl
from jax.experimental.pallas import tpu as pltpu


# ---------------------------------------------------------------------------
# Pallas kernel: one (batch, time-tile) block:  z = (M_eff @ x_tile) * mask
# ---------------------------------------------------------------------------
def _inv_conv_kernel(x_ref, mask_ref, w_ref, z_ref):
    # x_ref:    (1, C, tT)   activations, T on lanes (lane-dense)
    # mask_ref: (1, 1, tT)   sequence mask for this tile
    # w_ref:    (C, C)       dense effective mixing matrix
    # z_ref:    (1, C, tT)   output, same layout as input (lane-dense store)
    x = x_ref[0]                                               # (C, tT)
    z = jnp.dot(w_ref[...], x, preferred_element_type=jnp.float32)
    z_ref[0] = (z * mask_ref[0]).astype(z_ref.dtype)


def _pick_time_tile(t: int) -> int:
    # Lane-dense tiles (multiple of 128), capped at 512 so 2x-buffered
    # (x + z) tiles stay well inside v7x's 64 MiB VMEM at realistic C.
    for cand in (512, 256, 128):
        if t % cand == 0:
            return cand
    # TODO(synk): handle ragged T with a masked tail tile instead of full-T.
    return t


def _build_dense_weight(weight, channels: int, num_splits: int):
    """Fold the split/permute/un-permute into one dense [C, C] matrix."""
    ns = num_splits
    cg = channels // ns
    half = ns // 2
    idx = np.arange(channels)
    a = idx // (cg * half)
    rem = idx % (cg * half)
    j = rem // half
    k = rem % half
    # original channel i  ->  split-layout index p = (a*half + k) * cg + j
    perm = (a * half + k) * cg + j
    m_split = jnp.kron(weight, jnp.eye(cg, dtype=weight.dtype))  # (C, C)
    return m_split[perm][:, perm]                                # M_eff


# ---------------------------------------------------------------------------
# Wrapper (matches InvConvNear.forward)
# ---------------------------------------------------------------------------
def inv_conv_near(x, weight, x_mask=None, *, num_splits=4,
                  reverse=False, no_jacobian=False):
    """x: [B, C, T], weight: [num_splits, num_splits], x_mask: [B, 1, T] or None.

    Returns (z: [B, C, T], logdet: [B] or None).
    """
    B, C, T = x.shape
    assert C % num_splits == 0 and num_splits % 2 == 0

    if x_mask is None:
        mask = jnp.ones((B, 1, T), x.dtype)
        x_len = jnp.full((B,), float(T), x.dtype)
    else:
        mask = x_mask.astype(x.dtype)
        x_len = jnp.sum(mask, axis=(1, 2))

    if reverse:
        w = jnp.linalg.inv(weight.astype(jnp.float32)).astype(weight.dtype)
        logdet = None
    else:
        w = weight
        if no_jacobian:
            logdet = jnp.zeros_like(x_len)
        else:
            sign, logabs = jnp.linalg.slogdet(weight)
            logdet_w = jnp.where(sign > 0, logabs, jnp.nan)  # torch.logdet semantics
            logdet = logdet_w * (C / num_splits) * x_len

    w_eff = _build_dense_weight(w.astype(x.dtype), C, num_splits)   # (C, C)

    tT = _pick_time_tile(T)
    n_t = T // tT

    z = pl.pallas_call(
        _inv_conv_kernel,
        grid=(B, n_t),
        in_specs=[
            pl.BlockSpec((1, C, tT), lambda b, t: (b, 0, t)),   # x
            pl.BlockSpec((1, 1, tT), lambda b, t: (b, 0, t)),   # mask
            pl.BlockSpec((C, C), lambda b, t: (0, 0)),          # effective weight
        ],
        out_specs=pl.BlockSpec((1, C, tT), lambda b, t: (b, 0, t)),
        out_shape=jax.ShapeDtypeStruct((B, C, T), x.dtype),
        compiler_params=pltpu.CompilerParams(
            dimension_semantics=("parallel", "parallel"),
        ),
    )(x, mask, w_eff)

    return z, logdet


# ---------------------------------------------------------------------------
# Pure-JAX reference mirroring the PyTorch module exactly
# ---------------------------------------------------------------------------
def _reference_forward(x, x_mask, weight, num_splits=4,
                       reverse=False, no_jacobian=False):
    b, c, t = x.shape
    ns = num_splits
    cg = c // ns
    half = ns // 2

    if x_mask is None:
        mask = 1.0
        x_len = jnp.full((b,), float(t), x.dtype)
    else:
        mask = x_mask
        x_len = jnp.sum(x_mask, axis=(1, 2))

    x4 = x.reshape(b, 2, cg, half, t)
    x4 = jnp.transpose(x4, (0, 1, 3, 2, 4)).reshape(b, ns, cg, t)

    if reverse:
        w = jnp.linalg.inv(weight.astype(jnp.float32)).astype(weight.dtype)
        logdet = None
    else:
        w = weight
        if no_jacobian:
            logdet = jnp.zeros_like(x_len)
        else:
            sign, logabs = jnp.linalg.slogdet(weight)
            logdet = jnp.where(sign > 0, logabs, jnp.nan) * (c / ns) * x_len

    z4 = jnp.einsum("os,bsjt->bojt", w, x4,
                    precision=jax.lax.Precision.HIGHEST)
    z = jnp.transpose(z4.reshape(b, 2, half, cg, t), (0, 1, 3, 2, 4))
    z = z.reshape(b, c, t) * mask
    return z, logdet


if __name__ == "__main__":
    B, C, T, NS = 2, 16, 16, 4

    key = jax.random.PRNGKey(0)
    kw, kx = jax.random.split(key)

    # Orthogonal weight init as in the PyTorch module (QR of a normal matrix,
    # sign-fixed so det > 0).
    w0 = np.asarray(jax.random.normal(kw, (NS, NS), jnp.float32))
    q, _ = np.linalg.qr(w0)
    if np.linalg.det(q) < 0:
        q[:, 0] = -q[:, 0]
    weight = jnp.asarray(q, jnp.float32)

    x = jax.random.normal(kx, (B, C, T), jnp.float32)             # [B, C, T]
    lengths = jnp.array([T, 10], dtype=jnp.int32)
    x_mask = (jnp.arange(T)[None, None, :] < lengths[:, None, None]
              ).astype(jnp.float32)                               # [B, 1, T]

    z, logdet = jax.block_until_ready(
        inv_conv_near(x, weight, x_mask, num_splits=NS)
    )

    z_ref, logdet_ref = _reference_forward(x, x_mask, weight, num_splits=NS)
    np.testing.assert_allclose(np.asarray(z), np.asarray(z_ref),
                               rtol=1e-5, atol=1e-5)
    np.testing.assert_allclose(np.asarray(logdet), np.asarray(logdet_ref),
                               rtol=1e-5, atol=1e-5)

    assert z.shape == (B, C, T) and logdet.shape == (B,)
    print("KERNEL_OK")
</pallas_src>

<mosaic_0001>
module attributes {stable_mosaic.version = 11 : i64} {
  func.func @_inv_conv_kernel(%arg0: i32, %arg1: i32, %arg2: memref<1x16x16xf32, #tpu.memory_space<vmem>>, %arg3: memref<1x1x16xf32, #tpu.memory_space<vmem>>, %arg4: memref<16x16xf32, #tpu.memory_space<vmem>>, %arg5: memref<1x16x16xf32, #tpu.memory_space<vmem>>) attributes {dimension_semantics = [#tpu.dimension_semantics<parallel>, #tpu.dimension_semantics<parallel>], iteration_bounds = array<i64: 2, 1>, scalar_prefetch = 0 : i64, scratch_operands = 0 : i64, tpu.core_type = #tpu.core_type<tc>, window_params = [{transform_indices = @transform_0, window_bounds = array<i64: 1, 16, 16>}, {transform_indices = @transform_1, window_bounds = array<i64: 1, 1, 16>}, {pipeline_mode = #tpu.pipeline_mode<synchronous>, transform_indices = @transform_2, window_bounds = array<i64: 16, 16>}, {transform_indices = @transform_3, window_bounds = array<i64: 1, 16, 16>}]} {
    %c0 = arith.constant 0 : index
    %c0_0 = arith.constant 0 : index
    %c0_1 = arith.constant 0 : index
    %0 = vector.load %arg2[%c0, %c0_0, %c0_1] : memref<1x16x16xf32, #tpu.memory_space<vmem>>, vector<1x16x16xf32>
    %1 = vector.shape_cast %0 : vector<1x16x16xf32> to vector<16x16xf32>
    %c0_2 = arith.constant 0 : index
    %c0_3 = arith.constant 0 : index
    %2 = vector.load %arg4[%c0_2, %c0_3] : memref<16x16xf32, #tpu.memory_space<vmem>>, vector<16x16xf32>
    %cst = arith.constant dense<0.000000e+00> : vector<16x16xf32>
    %3 = tpu.matmul %2, %1, %cst {dimension_numbers = #tpu.dot_dimension_numbers<[1], [0], [0], [1], [0, 0, 1, 1], [], []>} : vector<16x16xf32>, vector<16x16xf32>, vector<16x16xf32> -> vector<16x16xf32>
    %c0_4 = arith.constant 0 : index
    %c0_5 = arith.constant 0 : index
    %c0_6 = arith.constant 0 : index
    %4 = vector.load %arg3[%c0_4, %c0_5, %c0_6] : memref<1x1x16xf32, #tpu.memory_space<vmem>>, vector<1x1x16xf32>
    %5 = vector.shape_cast %4 : vector<1x1x16xf32> to vector<1x16xf32>
    %6 = vector.broadcast %5 : vector<1x16xf32> to vector<16x16xf32>
    %7 = arith.mulf %3, %6 : vector<16x16xf32>
    %c0_7 = arith.constant 0 : index
    %c0_8 = arith.constant 0 : index
    %c0_9 = arith.constant 0 : index
    %8 = vector.load %arg5[%c0_7, %c0_8, %c0_9] : memref<1x16x16xf32, #tpu.memory_space<vmem>>, vector<1x16x16xf32>
    %9 = vector.shape_cast %8 : vector<1x16x16xf32> to vector<16x16xf32>
    %10 = vector.shape_cast %7 : vector<16x16xf32> to vector<1x16x16xf32>
    tpu.vector_store %arg5[%c0_7, %c0_8, %c0_9], %10 {strides = array<i32>} : memref<1x16x16xf32, #tpu.memory_space<vmem>>, vector<1x16x16xf32>,
    return
  }
  func.func @transform_0(%arg0: i32, %arg1: i32) -> (i32, i32, i32) {
    %c0_i32 = arith.constant 0 : i32
    %c0_i32_0 = arith.constant 0 : i32
    return %arg0, %c0_i32, %arg1 : i32, i32, i32
  }
  func.func @transform_1(%arg0: i32, %arg1: i32) -> (i32, i32, i32) {
    %c0_i32 = arith.constant 0 : i32
    %c0_i32_0 = arith.constant 0 : i32
    return %arg0, %c0_i32, %arg1 : i32, i32, i32
  }
  func.func @transform_2(%arg0: i32, %arg1: i32) -> (i32, i32) {
    %c0_i32 = arith.constant 0 : i32
    %c0_i32_0 = arith.constant 0 : i32
    %c0_i32_1 = arith.constant 0 : i32
    return %c0_i32, %c0_i32_0 : i32, i32
  }
  func.func @transform_3(%arg0: i32, %arg1: i32) -> (i32, i32, i32) {
    %c0_i32 = arith.constant 0 : i32
    %c0_i32_0 = arith.constant 0 : i32
    return %arg0, %c0_i32, %arg1 : i32, i32, i32
  }
}

</mosaic_0001>

<bundles_post_ra>
// kernel: tpu_custom_call.1
= control target key start
LH: loop header
LB: loop body
LE: loop exit
PB: predicated region body
PF: predicated region fallthrough
CT: control target
= control target key end

     0   :  { %8 = vsyncpa [#allocation3], 0  ;;  %s986_s0 = inlined_call_operand.hbm [shape: f32[2,16,16], index: 0, kind: input, shape index: {}]   ;;  %s987_s1 = inlined_call_operand.vmem [shape: f32[2,1,16], index: 1, kind: input, shape index: {}]   ;;  %s988_s2 = inlined_call_operand.hbm [shape: f32[16,16], index: 2, kind: input, shape index: {}]   ;;  %s989_s3 = inlined_call_operand.hbm [shape: f32[2,16,16], index: 3, kind: output, shape index: {}]  }
   0x1   :  { %10 = vsyncpa [#allocation3 + $0x1], 0 }
   0x2   :  { %11 = vsyncpa [#allocation6], 0 }
   0x3   :  { %12 = vsyncpa [#allocation4], 0 }
   0x4   :  { %14 = vsyncpa [#allocation4 + $0x1], 0  ;;  %s752_s12 = smov 0   ;;  %s754_s13 = smov 0  }
   0x5   :  { %s756_s14 = smov 0   ;;  %s758_s15 = smov 0  }
   0x6   :  { %s760_s16 = smov 0   ;;  %s762_s17 = smov 0  }
   0x7 LB: > { %s465_s18 = sadd.s32 4294967295, %s723_s17   ;;  %s466_s19 = sadd.s32 4294967294, %s723_s17   ;;  %s723_s17 = sphi %s762_s17, %s20_s17   ;;  %s719_s16 = sphi %s760_s16, %s1013_s16   ;;  %s715_s15 = sphi %s758_s15, %s1012_s15   ;;  %s711_s14 = sphi %s756_s14, %s1011_s14   ;;  %s707_s13 = sphi %s754_s13, %s1010_s13   ;;  %s703_s12 = sphi %s752_s12, %s1009_s12  }
   0x8   : > { %p54_p0 = scmp.ne.s32.totalorder %s707_s13, %s703_s12  ;;  %p786_p1 = scmp.eq.s32.totalorder %s465_s18, 0 }
   0x9   : > { %p790_p2 = scmp.eq.s32.totalorder %s465_s18, 1  ;;  %p135_p3 = scmp.eq.s32.totalorder %s466_s19, 1 }
   0xa   : > { %s994_s20 = scalar_select %p786_p1, 1, 0 }
   0xb   : > { %s995_s21 = scalar_select %p790_p2, 1, 0 }
   0xc   : > { %p796_p4 = por %p786_p1, %p54_p0  ;;  %p467_p5 = scmp.ge.s32.totalorder %s723_s17, 1 }
   0xd   : > { %p801_p6 = por %p135_p3, %p54_p0  ;;  %p142_p7 = scmp.lt.s32.totalorder %s723_s17, 3 }
   0xe   : > { %s996_s22 = scalar_select %p796_p4, 1, 0 }
   0xf   : > { %s997_s23 = scalar_select %p801_p6, 1, 0 }
  0x10   : > { %p806_p8 = pnand %p467_p5, %p142_p7  ;;  %s725_s25 = smov [#allocation5]  }
  0x11   : > { %s154_s26 = sshll.u32 %s725_s25, 4  ;;  %s32_s28 = sadd.s32 1, %s719_s16  ;;  %s155_s26 = int_to_ptr.vmem [resolvable:$true] %s154_s26 }
  0x12   : > { %s998_s24 = scalar_select %p806_p8, 1, 0 }
  0x13   : > { %p510_p9 = pneg %p806_p8  ;;  %s579_s4 = scalar_lea.hbm %s988_s2, 256 }
  0x14   : > { %p580_p12 = scmp.ne.s32.totalorder %s988_s2, %s579_s4  ;;  %p586_p5 = scmp.lt.u32.totalorder %s579_s4, %s988_s2 }
  0x15   : > { %p815_p11 = pnand %p510_p9, %p786_p1 }
  0x17   : > { %p581_p13 = pneg %p815_p11 }
  0x19   : > { %p582_p0 = pnand %p581_p13, %p580_p12 }
  0x1b   : > { %p583_p3 = pneg %p582_p0 }
  0x1d   : > { %p588_p7 = pnand %p586_p5, %p583_p3 }
  0x1f   : > { %591 = shalt.err (!%p588_p7)
}
  0x20   : > { %s592_s9 = scalar_lea.vmem %s155_s26, 256  ;;  %p600_p1 = scmp.lt.s32.totalorder %s155_s26, %s155_s26 }
  0x21   : > { %p593_p9 = scmp.ne.s32.totalorder %s155_s26, %s592_s9  ;;  %p601_p4 = scmp.lt.s32.totalorder %s592_s9, %s592_s9 }
  0x23   : > { %p595_p10 = pnand %p593_p9, %p581_p13  ;;  %p602_p8 = por %p601_p4, %p600_p1 }
  0x25   : > { %p596_p6 = pneg %p595_p10 }
  0x27   : > { %p603_p2 = pnand %p602_p8, %p596_p6 }
  0x29   : > { %606 = shalt.err (!%p603_p2)
}
  0x2a   : > { %s726_s10 = smov 128   ;;  %s727_s11 = smov 8  }
  0x2b   : > { %513 = dma.hbm_to_vmem [thread:$0]  (!%p815_p11), %s988_s2, 256, %s155_s26, [#allocation6], %s726_s10, %s726_s10, %s727_s11  }
  0x2c   : > { %p34_p1 = scmp.ge.s32.totalorder %s32_s28, 2  ;;  %s41_s25 = sadd.s32 1, %s711_s14 }
  0x2d   : > { %p48_p2 = scmp.ne.s32.totalorder %s711_s14, %s707_s13  ;;  %p49_p4 = scmp.eq.s32.totalorder %s723_s17, 0 }
  0x2e   : > { %s1015_s28 = smov (%p34_p1, %s32_s28), 0  ;;  %p1001_p8 = scmp.ne.s32.totalorder %s995_s21, 0 }
  0x2f   : > { %p845_p6 = por %p49_p4, %p48_p2  ;;  %s36_s30 = ssub.s32 %s719_s16, %s1015_s28 }
  0x30   : > { %p851_p10 = por %p1001_p8, %p48_p2  ;;  %p523_p12 = scmp.lt.s32.totalorder %s723_s17, 2 }
  0x31   : > { %p39_p11 = scmp.eq.s32.totalorder %s36_s30, 0  ;;  %s168_s26 = sand.u32 1, %s711_s14  }
  0x32   : > { %s470_s4 = sshll.u32 %s168_s26, 4  ;;  %s485_s6 = sshll.u32 %s719_s16, 8 }
  0x33   : > { %s860_s5 = scalar_select %p39_p11, %s711_s14, %s41_s25  }
  0x34   : > { %s866_s9 = scalar_lea.hbm %s986_s0, %s485_s6  ;;  %s172_s21 = scalar_lea.vmem [#allocation2], %s470_s4 }
  0x35   : > { %s180_s18 = sshll.u32 %s172_s21, 4  ;;  %p872_p13 = pnand %p523_p12, %p845_p6  ;;  %s868_s18 = int_to_ptr.vmem [resolvable:$true] %s180_s18 }
  0x36   : > { %s876_s25 = scalar_lea.sflag [#allocation3], %s168_s26  ;;  %s607_s30 = scalar_lea.hbm %s866_s9, 256 }
  0x37   : > { %p608_p0 = scmp.ne.s32.totalorder %s866_s9, %s607_s30  ;;  %p609_p3 = pneg %p872_p13 }
  0x38   : > { %s612_s29 = scalar_lea.hbm %s986_s0, 512  ;;  %p613_p9 = scmp.lt.u32.totalorder %s866_s9, %s986_s0 }
  0x39   : > { %p610_p5 = pnand %p609_p3, %p608_p0  ;;  %p614_p1 = scmp.lt.u32.totalorder %s612_s29, %s607_s30 }
  0x3a   : > { %p616_p4 = scmp.lt.u32.totalorder %s607_s30, %s866_s9 }
  0x3b   : > { %p611_p7 = pneg %p610_p5  ;;  %p615_p2 = por %p614_p1, %p613_p9 }
  0x3d   : > { %p617_p6 = por %p616_p4, %p615_p2 }
  0x3f   : > { %p618_p8 = pnand %p617_p6, %p611_p7 }
  0x41   : > { %621 = shalt.err (!%p618_p8)
}
  0x42   : > { %s622_s26 = scalar_lea.vmem %s868_s18, 256  ;;  %s728_s21 = smov [#allocation2]  }
  0x43   : > { %p623_p12 = scmp.ne.s32.totalorder %s868_s18, %s622_s26  ;;  %s627_s4 = sshll.u32 %s728_s21, 4  ;;  %s628_s4 = int_to_ptr.vmem [resolvable:$false] %s627_s4 }
  0x44   : > { %s629_s6 = scalar_lea.vmem %s628_s4, 512  ;;  %p630_p5 = scmp.lt.s32.totalorder %s868_s18, %s628_s4 }
  0x45   : > { %p625_p11 = pnand %p623_p12, %p609_p3  ;;  %p631_p9 = scmp.lt.s32.totalorder %s629_s6, %s622_s26 }
  0x47   : > { %p626_p0 = pneg %p625_p11  ;;  %p632_p1 = por %p631_p9, %p630_p5 }
  0x49   : > { %p633_p2 = pnand %p632_p1, %p626_p0 }
  0x4b   : > { %636 = shalt.err (!%p633_p2)
}
  0x4c   : > { %517 = dma.hbm_to_vmem [thread:$0]  (!%p872_p13), %s866_s9, 256, %s868_s18, %s876_s25, %s726_s10, %s726_s10, %s727_s11  }
  0x4d   : > { %p1004_p3 = scmp.ne.s32.totalorder %s998_s24, 0 }
  0x4e   : > { %s910_s30 = sand.u32 (!%p1004_p3), 1, %s707_s13   ;;  %p1005_p7 = scmp.ne.s32.totalorder (!%p1004_p3), %s996_s22, 0 }
  0x4f   : > { %201 = sbr.rel (%p1004_p3) target bundleno = 327 (0x147), region = 32  ;;  %s474_s29 = sshll.u32 (!%p1004_p3), %s910_s30, 4 }
  0x50   : > { %s204_s7 = scalar_lea.sflag (!%p1004_p3), [#allocation3], %s910_s30  ;;  %s207_s8 = scalar_lea.vmem (!%p1004_p3), [#allocation2], %s474_s29 }
  0x56   : > { %690 = dma.done.wait (%p1005_p7), %s204_s7, 256  }
  0x57   : > { %692 = vsyncadd (%p1005_p7), %s204_s7, 4294967040  ;;  %p1006_p4 = scmp.ne.s32.totalorder %s994_s20, 0 }
  0x59   : > { %694 = dma.done.wait (%p1006_p4), [#allocation6], 256  }
  0x5a   : > { %696 = vsyncadd (%p1006_p4), [#allocation6], 4294967040  ;;  %vm250_vm0 = vcmask 130048   ;;  %v246_v0 = vld [vmem:[%s207_s8] sm:$0xff]  ;;  %v247_v1 = vld [vmem:[%s207_s8 + $0x8] sm:$0xff]  ;;  %p240_p13 = scmp.lt.s32.totalorder %s715_s15, 1 }
  0x5b   : > { %v248_v2 = vld [vmem:[#allocation5] sm:$0xff]  ;;  %v498_v3 = vpack.c.bf16 %v247_v1, %v246_v0  ;;  %v249_v4 = vld [vmem:[#allocation5 + $0x8] sm:$0xff]  ;;  %s239_s11 = scalar_lea.vmem [#allocation7], %s474_s29  ;;  %s486_s18 = sshll.u32 %s715_s15, 8 }
  0x5c   : > { %495 = vmatprep.mubr.msk.f32.mxu0 %vm250_vm0, %v248_v2  ;;  %s241_s22 = scalar_select %p240_p13, %s715_s15, 1 }
  0x5d   : > { %499 = vmatprep.subr.bf16.mxu0 %v498_v3  ;;  %s358_s9 = sshll.u32 %s239_s11, 4  ;;  %s935_s26 = scalar_lea.hbm %s989_s3, %s486_s18  ;;  %s930_s9 = int_to_ptr.vmem [resolvable:$true] %s358_s9 }
  0x5e   : > { %501 = vmatpush3.bf16.msra.mxu0 %v498_v3  ;;  %s245_s10 = scalar_lea.vmem %s987_s1, %s241_s22  ;;  %s344_s21 = scalar_lea.sflag [#allocation4], %s910_s30 }
  0x5f   : > { %v479_v5 = vld [vmem:[%s245_s10] ss:$0 sm:$0xff]  ;;  %s637_s15 = scalar_lea.vmem %s930_s9, 256  ;;  %s729_s4 = smov [#allocation7]  }
  0x60   : > { %p638_p6 = scmp.ne.s32.totalorder %s930_s9, %s637_s15  ;;  %s641_s6 = sshll.u32 %s729_s4, 4  ;;  %s642_s6 = int_to_ptr.vmem [resolvable:$false] %s641_s6 }
  0x61   : > { %496 = vmatmul.mubr.msk.f32.vlgmr.msra.gmra.mrb[0].mxu0 %vm250_vm0, %v249_v4  ;;  %s643_s29 = scalar_lea.vmem %s642_s6, 512  ;;  %p644_p11 = scmp.lt.s32.totalorder %s930_s9, %s642_s6 }
  0x62   : > { %p639_p8 = pnand %p638_p6, %p851_p10  ;;  %p645_p0 = scmp.lt.s32.totalorder %s643_s29, %s637_s15 }
  0x64   : > { %p640_p12 = pneg %p639_p8  ;;  %p646_p5 = por %p645_p0, %p644_p11 }
  0x66   : > { %p647_p9 = pnand %p646_p5, %p640_p12 }
 0x134   : > { %v497_v6 = vpop.f32.mrb[0].mxu0 }
 0x135   : > { %v340_v7 = vmul.f32 %v497_v6, %v479_v5  ;;  %v323_v8 = vpop.f32.mrb[1].mxu0 }
 0x136   : > { %v339_v9 = vmul.f32 %v479_v5, %v323_v8 }
 0x137   : > { %342 = vst.msk [vmem:[%s239_s11 + $0x8] sm:$0xff] %vm250_vm0, %v340_v7 }
 0x138   : > { %341 = vst.msk [vmem:[%s239_s11] sm:$0xff] %vm250_vm0, %v339_v9 }
 0x139   : > { %650 = shalt.err (!%p647_p9)
}
 0x13a   : > { %s651_s7 = scalar_lea.hbm %s935_s26, 256  ;;  %s655_s20 = scalar_lea.hbm %s989_s3, 512 }
 0x13b   : > { %p652_p1 = scmp.ne.s32.totalorder %s935_s26, %s651_s7  ;;  %p656_p7 = scmp.lt.u32.totalorder %s935_s26, %s989_s3 }
 0x13c   : > { %p657_p4 = scmp.lt.u32.totalorder %s655_s20, %s651_s7  ;;  %p659_p6 = scmp.lt.u32.totalorder %s651_s7, %s935_s26 }
 0x13d   : > { %p653_p2 = pnand %p652_p1, %p851_p10 }
 0x13e   : > { %p658_p13 = por %p657_p4, %p656_p7 }
 0x13f   : > { %p654_p3 = pneg %p653_p2 }
 0x140   : > { %p660_p8 = por %p659_p6, %p658_p13 }
 0x142   : > { %p661_p12 = pnand %p660_p8, %p654_p3 }
 0x144   : > { %664 = shalt.err (!%p661_p12)
}
 0x145   : > { %s730_s11 = smov 128   ;;  %s731_s18 = smov 8  }
 0x146   : > { %508 = dma.vmem_to_hbm [thread:$0]  (%p851_p10), %s930_s9, 256, %s935_s26, %s344_s21, %s730_s11, %s730_s11, %s731_s18  }
 0x147 PF: > { %s373_s19 = sand.u32 1, %s703_s12   ;;  %p1007_p11 = scmp.ne.s32.totalorder %s997_s23, 0 }
 0x148   : > { %p1008_p0 = scmp.ge.s32.totalorder %s723_s17, 2  ;;  %s374_s25 = scalar_lea.sflag [#allocation4], %s373_s19 }
 0x14a   : > { %p519_p5 = pnand %p1008_p0, %p1007_p11 }
 0x14c   : > { %698 = dma.done.wait (!%p519_p5), %s374_s25, 256  }
 0x14d   : > { %700 = vsyncadd (!%p519_p5), %s374_s25, 4294967040  ;;  %s20_s17 = sadd.s32 1, %s723_s17   ;;  %s1009_s12 = smov %s707_s13 }
 0x14e   : > { %p17_p9 = scmp.ge.s32.totalorder %s20_s17, 4   ;;  %s1010_s13 = smov %s711_s14 }
 0x14f   : > { %s1011_s14 = smov %s860_s5  ;;  %s1012_s15 = smov %s719_s16 }
 0x150   : > { %s1013_s16 = smov %s1015_s28  ;;  %19 = sbr.rel (!%p17_p9) target bundleno = 7 (0x7), region = 84 }
 0x157   :  { %379 = vsyncpa [#allocation3], 1 }
 0x158   :  { %381 = vsyncpa [#allocation3 + $0x1], 1 }
 0x159   :  { %382 = vsyncpa [#allocation6], 1 }
 0x15a   :  { %383 = vsyncpa [#allocation4], 1 }
 0x15b   :  { %385 = vsyncpa [#allocation4 + $0x1], 1 }

</bundles_post_ra>
